<compile_context>
chip_gen: v7x
topology: tpu7x:2x2x1
jax: 0.10.0
libtpu: 0.0.40
codegen_flags: <defaults>
</compile_context>

<pallas_src>
import functools

import jax
import jax.numpy as jnp
from jax import lax
from jax.experimental import pallas as pl
from jax.experimental.pallas import tpu as pltpu


# ---------------------------------------------------------------------------
# Configuration (small, consistent with the module: dim=3 cartesian tensors)
# ---------------------------------------------------------------------------
DIM = 3
H_RANK_MAX = 1          # h has ranks 0..1            -> 1 + 3 = 4 components
SELF_TP_RANK_MAX = 2    # edge_attr has ranks 0..2    -> 1 + 3 + 9 = 13 components
BASIS_RANK_MAX = 2      # outputs A^(0), A^(1), A^(2) -> 1 + 3 + 9 = 13 components
N_CHANNELS = 8
N_NODES = 8
N_EDGES = 20            # deliberately not a multiple of 8 (exercises padding)


def _round_up(x, m):
    return ((x + m - 1) // m) * m


def find_combinations(a_max, b_max, desired_sum):
    combinations = []
    if desired_sum > a_max + b_max or desired_sum < 0:
        return combinations
    a_start = max(0, desired_sum - b_max)
    a_end = min(a_max, desired_sum)
    for a in range(a_start, a_end + 1):
        combinations.append((a, desired_sum - a))
    return combinations


# ---------------------------------------------------------------------------
# Pallas kernel: fused channel mixing + all contractions + one-hot scatter-sum
# (output slab is a grid-resident accumulator over edge tiles).
# ---------------------------------------------------------------------------
def atomic_basis_kernel(x_ref, w_ref, recv_ref, out_ref, *, c, dim):
    @pl.when(pl.program_id(0) == 0)
    def _init():
        out_ref[...] = jnp.zeros_like(out_ref)

    nh = 1 + dim                       # h components (rank 0 + rank 1)
    te = x_ref.shape[0]
    n_nodes = out_ref.shape[0]
    out_w = out_ref.shape[1]

    x = x_ref[...]                     # (TE, (nh+ne)*C) f32, lane-dense
    h_raw = x[:, : nh * c]             # (TE, nh*C)
    e_all = x[:, nh * c:]              # (TE, 13*C)

    # Fused channel mixing: einsum('ij,kj->ki', W_r, h_r) for all components at
    # once via the block-diagonal weight diag(W0, W1, W1, W1):  h_raw @ Wbd^T.
    hm = lax.dot_general(h_raw, w_ref[...], (((1,), (1,)), ((), ())),
                         preferred_element_type=jnp.float32)      # (TE, nh*C)

    def hcol(d):
        return hm[:, d * c:(d + 1) * c]

    def ecol(m):
        return e_all[:, m * c:(m + 1) * c]

    h0 = hcol(0)
    h1 = [hcol(1 + d) for d in range(dim)]
    e0 = ecol(0)
    e1 = [ecol(1 + d) for d in range(dim)]
    e2 = [[ecol(1 + dim + dim * i + j) for j in range(dim)] for i in range(dim)]

    tr_e2 = e2[0][0]
    for d in range(1, dim):
        tr_e2 = tr_e2 + e2[d][d]

    # ---- rank-0 contributions: '00:0', '02:0', '11:0' ----
    r0 = h0 * e0 + h0 * tr_e2
    for d in range(dim):
        r0 = r0 + h1[d] * e1[d]

    # ---- rank-1 contributions: '01:1', '10:1', '12:1' (3 contraction paths) ----
    r1 = []
    for i in range(dim):
        t = h0 * e1[i] + h1[i] * e0 + h1[i] * tr_e2
        for d in range(dim):
            t = t + h1[d] * e2[i][d] + h1[d] * e2[d][i]
        r1.append(t)

    # ---- rank-2 contributions: '02:2', '11:2' ----
    r2 = []
    for i in range(dim):
        for j in range(dim):
            r2.append(h0 * e2[i][j] + h1[i] * e1[j])

    # Pack the 13 components along the lane axis and pad to the 128-wide slab.
    pieces = [r0] + r1 + r2
    packed_w = len(pieces) * c
    if out_w > packed_w:
        pieces.append(jnp.zeros((te, out_w - packed_w), jnp.float32))
    r_mat = jnp.concatenate(pieces, axis=1)                        # (TE, out_w)

    # In-kernel one-hot over receiver nodes; one fused MXU matmul does the
    # scatter-sum for all 13 components:  out += oh^T @ R.
    recv = recv_ref[...]                                           # (TE, 1) i32
    node_ids = lax.broadcasted_iota(jnp.int32, (te, n_nodes), 1)
    oh = (node_ids == recv).astype(jnp.float32)                    # (TE, N)

    out_ref[...] += lax.dot_general(oh, r_mat, (((0,), (0,)), ((), ())),
                                    preferred_element_type=jnp.float32)


# ---------------------------------------------------------------------------
# Wrapper (glue: gather, layout packing, padding, pallas_call, unpacking)
# ---------------------------------------------------------------------------
@functools.partial(jax.jit, static_argnames=("n_nodes", "edge_tile"))
def atomic_basis_forward(h_list, edge_attr_list, edge_index, channel_weights,
                         n_nodes, edge_tile=512):
    E = edge_index.shape[1]
    C = channel_weights.shape[-1]
    N = n_nodes
    nh = 1 + DIM                    # h components
    ne = 1 + DIM + DIM * DIM        # edge_attr components
    n_out = 1 + DIM + DIM * DIM     # output components

    recv = edge_index[0].astype(jnp.int32)
    send = edge_index[1]

    # gather neighbour features onto edges (plain-JAX glue)
    h0_g = h_list[0][send].astype(jnp.float32)                       # (E, C)
    h1_g = h_list[1][send].astype(jnp.float32)                       # (E, C, 3)

    # pack everything channels-last, component-major along the lane axis
    h1_p = jnp.transpose(h1_g, (0, 2, 1)).reshape(E, DIM * C)
    e0_p = edge_attr_list[0].astype(jnp.float32)                     # (E, C)
    e1_p = jnp.transpose(edge_attr_list[1], (0, 2, 1)).reshape(E, DIM * C)
    e2_p = jnp.transpose(edge_attr_list[2],
                         (0, 2, 3, 1)).reshape(E, DIM * DIM * C)
    x = jnp.concatenate([h0_g, h1_p, e0_p.astype(jnp.float32),
                         e1_p.astype(jnp.float32),
                         e2_p.astype(jnp.float32)], axis=1)          # (E, 17C)

    # block-diagonal fused channel-mix weight diag(W0, W1, W1, W1)
    wbd = jnp.zeros((nh * C, nh * C), jnp.float32)
    wbd = wbd.at[:C, :C].set(channel_weights[0].astype(jnp.float32))
    for d in range(DIM):
        s = (1 + d) * C
        wbd = wbd.at[s:s + C, s:s + C].set(
            channel_weights[1].astype(jnp.float32))

    # edge tiling: large tile (toy size -> single grid step); pad the remainder
    # with zero rows (zero data contributes nothing regardless of recv id).
    TE = _round_up(min(edge_tile, E), 8)
    E_pad = _round_up(E, TE)
    pad = E_pad - E
    recv_col = recv.reshape(E, 1)
    if pad:
        x = jnp.pad(x, ((0, pad), (0, 0)))
        recv_col = jnp.pad(recv_col, ((0, pad), (0, 0)))

    out_w = _round_up(n_out * C, 128)   # lane-dense, unmasked output stores

    out = pl.pallas_call(
        functools.partial(atomic_basis_kernel, c=C, dim=DIM),
        out_shape=jax.ShapeDtypeStruct((N, out_w), jnp.float32),
        grid_spec=pltpu.PrefetchScalarGridSpec(
            num_scalar_prefetch=0,
            grid=(E_pad // TE,),
            in_specs=[
                pl.BlockSpec((TE, (nh + ne) * C), lambda e: (e, 0)),
                pl.BlockSpec((nh * C, nh * C), lambda e: (0, 0)),
                pl.BlockSpec((TE, 1), lambda e: (e, 0)),
            ],
            out_specs=pl.BlockSpec((N, out_w), lambda e: (0, 0)),
        ),
        compiler_params=pltpu.CompilerParams(
            dimension_semantics=("arbitrary",)),
    )(x, wbd, recv_col)

    # unpack the (N, 13*C) slab back to [A^0 (N,C), A^1 (N,C,3), A^2 (N,C,3,3)]
    packed = out[:, : n_out * C]
    a0 = packed[:, :C]
    a1 = jnp.transpose(packed[:, C:(1 + DIM) * C].reshape(N, DIM, C),
                       (0, 2, 1))
    a2 = jnp.transpose(packed[:, (1 + DIM) * C:].reshape(N, DIM, DIM, C),
                       (0, 3, 1, 2))
    return [a0, a1, a2]


# ---------------------------------------------------------------------------
# Pure-JAX reference mirroring the PyTorch forward
# ---------------------------------------------------------------------------
def atomic_basis_reference(h_list, edge_attr_list, edge_index, channel_weights,
                           n_nodes):
    recv, send = edge_index[0], edge_index[1]
    h = [g[send] for g in h_list]
    h = [jnp.einsum('ij,kj...->ki...', channel_weights[r], h[r])
         for r in range(H_RANK_MAX + 1)]
    e = edge_attr_list

    t0, t1, t2 = [], [], []
    # '00:0'
    t0.append(h[0] * e[0])
    # '01:1', '10:1'
    t1.append(h[0][:, :, None] * e[1])
    t1.append(h[1] * e[0][:, :, None])
    # '02:0', '02:2'
    tr_e2 = jnp.trace(e[2], axis1=-2, axis2=-1)
    t0.append(h[0] * tr_e2)
    t2.append(h[0][:, :, None, None] * e[2])
    # '11:0', '11:2'
    t0.append(jnp.einsum('kcd,kcd->kc', h[1], e[1]))
    t2.append(h[1][:, :, :, None] * e[1][:, :, None, :])
    # '12:1' (three contraction paths)
    t1.append(h[1] * tr_e2[:, :, None])
    t1.append(jnp.einsum('kcd,kcid->kci', h[1], e[2]))
    t1.append(jnp.einsum('kcd,kcdi->kci', h[1], e[2]))

    def scatter_sum(v):
        shape = (n_nodes,) + v.shape[1:]
        return jnp.zeros(shape, jnp.float32).at[recv].add(v)

    return [scatter_sum(sum(t0)), scatter_sum(sum(t1)), scatter_sum(sum(t2))]


# ---------------------------------------------------------------------------
# Deterministic setup + run
# ---------------------------------------------------------------------------
def init_orthogonal_weights(key, n_channels, extra_dim):
    m = jax.random.normal(key, (extra_dim, n_channels, n_channels), jnp.float32)
    q, _ = jnp.linalg.qr(m)
    return q


if __name__ == "__main__":
    key = jax.random.PRNGKey(0)
    k = jax.random.split(key, 8)

    h_list = [
        jax.random.normal(k[0], (N_NODES, N_CHANNELS), jnp.float32),
        jax.random.normal(k[1], (N_NODES, N_CHANNELS, DIM), jnp.float32),
    ]
    edge_attr_list = [
        jax.random.normal(k[2], (N_EDGES, N_CHANNELS), jnp.float32),
        jax.random.normal(k[3], (N_EDGES, N_CHANNELS, DIM), jnp.float32),
        jax.random.normal(k[4], (N_EDGES, N_CHANNELS, DIM, DIM), jnp.float32),
    ]
    edge_index = jnp.stack([
        jax.random.randint(k[5], (N_EDGES,), 0, N_NODES),
        jax.random.randint(k[6], (N_EDGES,), 0, N_NODES),
    ]).astype(jnp.int32)
    channel_weights = init_orthogonal_weights(k[7], N_CHANNELS, H_RANK_MAX + 1)

    a_ref = atomic_basis_reference(h_list, edge_attr_list, edge_index,
                                   channel_weights, n_nodes=N_NODES)

    # (1) single-step grid at toy size (whole edge set in one tile, per review)
    # (2) small tile to exercise multi-step accumulation + edge-padding path
    for tile in (512, 8):
        a_set = atomic_basis_forward(h_list, edge_attr_list, edge_index,
                                     channel_weights, n_nodes=N_NODES,
                                     edge_tile=tile)
        a_set = [jax.block_until_ready(a) for a in a_set]
        for a, r in zip(a_set, a_ref):
            assert a.shape == r.shape and a.dtype == r.dtype
            assert jnp.allclose(a, r, rtol=1e-4, atol=1e-4)

    print("KERNEL_OK")
</pallas_src>

<mosaic_0001>
module attributes {stable_mosaic.version = 11 : i64} {
  func.func @atomic_basis_kernel(%arg0: i32, %arg1: memref<24x136xf32, #tpu.memory_space<vmem>>, %arg2: memref<32x32xf32, #tpu.memory_space<vmem>>, %arg3: memref<24x1xi32, #tpu.memory_space<vmem>>, %arg4: memref<8x128xf32, #tpu.memory_space<vmem>>) attributes {dimension_semantics = [#tpu.dimension_semantics<arbitrary>], iteration_bounds = array<i64: 1>, scalar_prefetch = 0 : i64, scratch_operands = 0 : i64, tpu.core_type = #tpu.core_type<tc>, window_params = [{transform_indices = @transform_0, window_bounds = array<i64: 24, 136>}, {pipeline_mode = #tpu.pipeline_mode<synchronous>, transform_indices = @transform_1, window_bounds = array<i64: 32, 32>}, {transform_indices = @transform_2, window_bounds = array<i64: 24, 1>}, {pipeline_mode = #tpu.pipeline_mode<synchronous>, transform_indices = @transform_3, window_bounds = array<i64: 8, 128>}]} {
    %c0_i32 = arith.constant 0 : i32
    %0 = arith.cmpi eq, %arg0, %c0_i32 : i32
    %1 = arith.extui %0 : i1 to i32
    %c0_i32_0 = arith.constant 0 : i32
    %2 = arith.cmpi ne, %1, %c0_i32_0 : i32
    scf.if %2 {
      %cst_12 = arith.constant 0.000000e+00 : f32
      %126 = vector.broadcast %cst_12 : f32 to vector<8x128xf32>
      %c0_13 = arith.constant 0 : index
      %c0_14 = arith.constant 0 : index
      %127 = vector.load %arg4[%c0_13, %c0_14] : memref<8x128xf32, #tpu.memory_space<vmem>>, vector<8x128xf32>
      tpu.vector_store %arg4[%c0_13, %c0_14], %126 {strides = array<i32>} : memref<8x128xf32, #tpu.memory_space<vmem>>, vector<8x128xf32>,
    } else {
    }
    %c0 = arith.constant 0 : index
    %c0_1 = arith.constant 0 : index
    %3 = vector.load %arg1[%c0, %c0_1] : memref<24x136xf32, #tpu.memory_space<vmem>>, vector<24x136xf32>
    %4 = vector.extract_strided_slice %3 {offsets = [0, 0], sizes = [24, 32], strides = [1, 1]} : vector<24x136xf32> to vector<24x32xf32>
    %5 = vector.extract_strided_slice %3 {offsets = [0, 32], sizes = [24, 104], strides = [1, 1]} : vector<24x136xf32> to vector<24x104xf32>
    %c0_2 = arith.constant 0 : index
    %c0_3 = arith.constant 0 : index
    %6 = vector.load %arg2[%c0_2, %c0_3] : memref<32x32xf32, #tpu.memory_space<vmem>>, vector<32x32xf32>
    %cst = arith.constant dense<0.000000e+00> : vector<24x32xf32>
    %7 = tpu.matmul %4, %6, %cst {dimension_numbers = #tpu.dot_dimension_numbers<[1], [1], [0], [0], [0, 0, 1, 0], [], []>} : vector<24x32xf32>, vector<32x32xf32>, vector<24x32xf32> -> vector<24x32xf32>
    %8 = vector.extract_strided_slice %7 {offsets = [0, 0], sizes = [24, 8], strides = [1, 1]} : vector<24x32xf32> to vector<24x8xf32>
    %9 = vector.extract_strided_slice %7 {offsets = [0, 8], sizes = [24, 8], strides = [1, 1]} : vector<24x32xf32> to vector<24x8xf32>
    %10 = vector.extract_strided_slice %7 {offsets = [0, 16], sizes = [24, 8], strides = [1, 1]} : vector<24x32xf32> to vector<24x8xf32>
    %11 = vector.extract_strided_slice %7 {offsets = [0, 24], sizes = [24, 8], strides = [1, 1]} : vector<24x32xf32> to vector<24x8xf32>
    %12 = vector.extract_strided_slice %5 {offsets = [0, 0], sizes = [24, 8], strides = [1, 1]} : vector<24x104xf32> to vector<24x8xf32>
    %13 = vector.extract_strided_slice %5 {offsets = [0, 8], sizes = [24, 8], strides = [1, 1]} : vector<24x104xf32> to vector<24x8xf32>
    %14 = vector.extract_strided_slice %5 {offsets = [0, 16], sizes = [24, 8], strides = [1, 1]} : vector<24x104xf32> to vector<24x8xf32>
    %15 = vector.extract_strided_slice %5 {offsets = [0, 24], sizes = [24, 8], strides = [1, 1]} : vector<24x104xf32> to vector<24x8xf32>
    %16 = vector.extract_strided_slice %5 {offsets = [0, 32], sizes = [24, 8], strides = [1, 1]} : vector<24x104xf32> to vector<24x8xf32>
    %17 = vector.extract_strided_slice %5 {offsets = [0, 40], sizes = [24, 8], strides = [1, 1]} : vector<24x104xf32> to vector<24x8xf32>
    %18 = vector.extract_strided_slice %5 {offsets = [0, 48], sizes = [24, 8], strides = [1, 1]} : vector<24x104xf32> to vector<24x8xf32>
    %19 = vector.extract_strided_slice %5 {offsets = [0, 56], sizes = [24, 8], strides = [1, 1]} : vector<24x104xf32> to vector<24x8xf32>
    %20 = vector.extract_strided_slice %5 {offsets = [0, 64], sizes = [24, 8], strides = [1, 1]} : vector<24x104xf32> to vector<24x8xf32>
    %21 = vector.extract_strided_slice %5 {offsets = [0, 72], sizes = [24, 8], strides = [1, 1]} : vector<24x104xf32> to vector<24x8xf32>
    %22 = vector.extract_strided_slice %5 {offsets = [0, 80], sizes = [24, 8], strides = [1, 1]} : vector<24x104xf32> to vector<24x8xf32>
    %23 = vector.extract_strided_slice %5 {offsets = [0, 88], sizes = [24, 8], strides = [1, 1]} : vector<24x104xf32> to vector<24x8xf32>
    %24 = vector.extract_strided_slice %5 {offsets = [0, 96], sizes = [24, 8], strides = [1, 1]} : vector<24x104xf32> to vector<24x8xf32>
    %25 = arith.addf %16, %20 : vector<24x8xf32>
    %26 = arith.addf %25, %24 : vector<24x8xf32>
    %27 = arith.mulf %8, %12 : vector<24x8xf32>
    %28 = arith.mulf %8, %26 : vector<24x8xf32>
    %29 = arith.addf %27, %28 : vector<24x8xf32>
    %30 = arith.mulf %9, %13 : vector<24x8xf32>
    %31 = arith.addf %29, %30 : vector<24x8xf32>
    %32 = arith.mulf %10, %14 : vector<24x8xf32>
    %33 = arith.addf %31, %32 : vector<24x8xf32>
    %34 = arith.mulf %11, %15 : vector<24x8xf32>
    %35 = arith.addf %33, %34 : vector<24x8xf32>
    %36 = arith.mulf %8, %13 : vector<24x8xf32>
    %37 = arith.mulf %9, %12 : vector<24x8xf32>
    %38 = arith.addf %36, %37 : vector<24x8xf32>
    %39 = arith.mulf %9, %26 : vector<24x8xf32>
    %40 = arith.addf %38, %39 : vector<24x8xf32>
    %41 = arith.mulf %9, %16 : vector<24x8xf32>
    %42 = arith.addf %40, %41 : vector<24x8xf32>
    %43 = arith.mulf %9, %16 : vector<24x8xf32>
    %44 = arith.addf %42, %43 : vector<24x8xf32>
    %45 = arith.mulf %10, %17 : vector<24x8xf32>
    %46 = arith.addf %44, %45 : vector<24x8xf32>
    %47 = arith.mulf %10, %19 : vector<24x8xf32>
    %48 = arith.addf %46, %47 : vector<24x8xf32>
    %49 = arith.mulf %11, %18 : vector<24x8xf32>
    %50 = arith.addf %48, %49 : vector<24x8xf32>
    %51 = arith.mulf %11, %22 : vector<24x8xf32>
    %52 = arith.addf %50, %51 : vector<24x8xf32>
    %53 = arith.mulf %8, %14 : vector<24x8xf32>
    %54 = arith.mulf %10, %12 : vector<24x8xf32>
    %55 = arith.addf %53, %54 : vector<24x8xf32>
    %56 = arith.mulf %10, %26 : vector<24x8xf32>
    %57 = arith.addf %55, %56 : vector<24x8xf32>
    %58 = arith.mulf %9, %19 : vector<24x8xf32>
    %59 = arith.addf %57, %58 : vector<24x8xf32>
    %60 = arith.mulf %9, %17 : vector<24x8xf32>
    %61 = arith.addf %59, %60 : vector<24x8xf32>
    %62 = arith.mulf %10, %20 : vector<24x8xf32>
    %63 = arith.addf %61, %62 : vector<24x8xf32>
    %64 = arith.mulf %10, %20 : vector<24x8xf32>
    %65 = arith.addf %63, %64 : vector<24x8xf32>
    %66 = arith.mulf %11, %21 : vector<24x8xf32>
    %67 = arith.addf %65, %66 : vector<24x8xf32>
    %68 = arith.mulf %11, %23 : vector<24x8xf32>
    %69 = arith.addf %67, %68 : vector<24x8xf32>
    %70 = arith.mulf %8, %15 : vector<24x8xf32>
    %71 = arith.mulf %11, %12 : vector<24x8xf32>
    %72 = arith.addf %70, %71 : vector<24x8xf32>
    %73 = arith.mulf %11, %26 : vector<24x8xf32>
    %74 = arith.addf %72, %73 : vector<24x8xf32>
    %75 = arith.mulf %9, %22 : vector<24x8xf32>
    %76 = arith.addf %74, %75 : vector<24x8xf32>
    %77 = arith.mulf %9, %18 : vector<24x8xf32>
    %78 = arith.addf %76, %77 : vector<24x8xf32>
    %79 = arith.mulf %10, %23 : vector<24x8xf32>
    %80 = arith.addf %78, %79 : vector<24x8xf32>
    %81 = arith.mulf %10, %21 : vector<24x8xf32>
    %82 = arith.addf %80, %81 : vector<24x8xf32>
    %83 = arith.mulf %11, %24 : vector<24x8xf32>
    %84 = arith.addf %82, %83 : vector<24x8xf32>
    %85 = arith.mulf %11, %24 : vector<24x8xf32>
    %86 = arith.addf %84, %85 : vector<24x8xf32>
    %87 = arith.mulf %8, %16 : vector<24x8xf32>
    %88 = arith.mulf %9, %13 : vector<24x8xf32>
    %89 = arith.addf %87, %88 : vector<24x8xf32>
    %90 = arith.mulf %8, %17 : vector<24x8xf32>
    %91 = arith.mulf %9, %14 : vector<24x8xf32>
    %92 = arith.addf %90, %91 : vector<24x8xf32>
    %93 = arith.mulf %8, %18 : vector<24x8xf32>
    %94 = arith.mulf %9, %15 : vector<24x8xf32>
    %95 = arith.addf %93, %94 : vector<24x8xf32>
    %96 = arith.mulf %8, %19 : vector<24x8xf32>
    %97 = arith.mulf %10, %13 : vector<24x8xf32>
    %98 = arith.addf %96, %97 : vector<24x8xf32>
    %99 = arith.mulf %8, %20 : vector<24x8xf32>
    %100 = arith.mulf %10, %14 : vector<24x8xf32>
    %101 = arith.addf %99, %100 : vector<24x8xf32>
    %102 = arith.mulf %8, %21 : vector<24x8xf32>
    %103 = arith.mulf %10, %15 : vector<24x8xf32>
    %104 = arith.addf %102, %103 : vector<24x8xf32>
    %105 = arith.mulf %8, %22 : vector<24x8xf32>
    %106 = arith.mulf %11, %13 : vector<24x8xf32>
    %107 = arith.addf %105, %106 : vector<24x8xf32>
    %108 = arith.mulf %8, %23 : vector<24x8xf32>
    %109 = arith.mulf %11, %14 : vector<24x8xf32>
    %110 = arith.addf %108, %109 : vector<24x8xf32>
    %111 = arith.mulf %8, %24 : vector<24x8xf32>
    %112 = arith.mulf %11, %15 : vector<24x8xf32>
    %113 = arith.addf %111, %112 : vector<24x8xf32>
    %cst_4 = arith.constant 0.000000e+00 : f32
    %114 = vector.broadcast %cst_4 : f32 to vector<24x24xf32>
    %115 = tpu.concatenate %35, %52, %69, %86, %89, %92, %95, %98, %101, %104, %107, %110, %113, %114 in 1 : vector<24x8xf32>, vector<24x8xf32>, vector<24x8xf32>, vector<24x8xf32>, vector<24x8xf32>, vector<24x8xf32>, vector<24x8xf32>, vector<24x8xf32>, vector<24x8xf32>, vector<24x8xf32>, vector<24x8xf32>, vector<24x8xf32>, vector<24x8xf32>, vector<24x24xf32> -> vector<24x128xf32>
    %c0_5 = arith.constant 0 : index
    %c0_6 = arith.constant 0 : index
    %116 = vector.load %arg3[%c0_5, %c0_6] : memref<24x1xi32, #tpu.memory_space<vmem>>, vector<24x1xi32>
    %117 = tpu.iota {dimensions = array<i32: 1>} : vector<24x8xi32>
    %118 = vector.broadcast %116 : vector<24x1xi32> to vector<24x8xi32>
    %119 = arith.cmpi eq, %117, %118 : vector<24x8xi32>
    %120 = arith.extui %119 : vector<24x8xi1> to vector<24x8xi32>
    %121 = arith.sitofp %120 : vector<24x8xi32> to vector<24x8xf32>
    %c0_7 = arith.constant 0 : index
    %c0_8 = arith.constant 0 : index
    %122 = vector.load %arg4[%c0_7, %c0_8] : memref<8x128xf32, #tpu.memory_space<vmem>>, vector<8x128xf32>
    %cst_9 = arith.constant dense<0.000000e+00> : vector<8x128xf32>
    %123 = tpu.matmul %121, %115, %cst_9 {dimension_numbers = #tpu.dot_dimension_numbers<[0], [0], [1], [1], [0, 1, 1, 1], [], []>} : vector<24x8xf32>, vector<24x128xf32>, vector<8x128xf32> -> vector<8x128xf32>
    %124 = arith.addf %122, %123 : vector<8x128xf32>
    %c0_10 = arith.constant 0 : index
    %c0_11 = arith.constant 0 : index
    %125 = vector.load %arg4[%c0_10, %c0_11] : memref<8x128xf32, #tpu.memory_space<vmem>>, vector<8x128xf32>
    tpu.vector_store %arg4[%c0_10, %c0_11], %124 {strides = array<i32>} : memref<8x128xf32, #tpu.memory_space<vmem>>, vector<8x128xf32>,
    return
  }
  func.func @transform_0(%arg0: i32) -> (i32, i32) {
    %c0_i32 = arith.constant 0 : i32
    %c0_i32_0 = arith.constant 0 : i32
    return %arg0, %c0_i32 : i32, i32
  }
  func.func @transform_1(%arg0: i32) -> (i32, i32) {
    %c0_i32 = arith.constant 0 : i32
    %c0_i32_0 = arith.constant 0 : i32
    %c0_i32_1 = arith.constant 0 : i32
    return %c0_i32, %c0_i32_0 : i32, i32
  }
  func.func @transform_2(%arg0: i32) -> (i32, i32) {
    %c0_i32 = arith.constant 0 : i32
    %c0_i32_0 = arith.constant 0 : i32
    return %arg0, %c0_i32 : i32, i32
  }
  func.func @transform_3(%arg0: i32) -> (i32, i32) {
    %c0_i32 = arith.constant 0 : i32
    %c0_i32_0 = arith.constant 0 : i32
    %c0_i32_1 = arith.constant 0 : i32
    return %c0_i32, %c0_i32_0 : i32, i32
  }
}

</mosaic_0001>

<bundles_post_ra>
// kernel: atomic_basis_forward.1
= control target key start
LH: loop header
LB: loop body
LE: loop exit
PB: predicated region body
PF: predicated region fallthrough
CT: control target
= control target key end

     0   :  { %vm29_vm0 = vcmask 261120   ;;  %v1302_v1 = vmov 0.0|0.0   ;;  %vm1303_vm1 = vmmov 0   ;;  %v2247_v4 = vmov 0.0   ;;  %s1305_s18 = smov 96   ;;  %s1306_s21 = smov 64   ;;  %s2243_s0 = inlined_call_operand.vmem [shape: f32[24,136], index: 0, kind: input, shape index: {}]   ;;  %s2244_s1 = inlined_call_operand.vmem [shape: f32[32,32], index: 1, kind: input, shape index: {}]   ;;  %s2245_s2 = inlined_call_operand.vmem [shape: s32[24,1], index: 2, kind: input, shape index: {}]   ;;  %s2246_s3 = inlined_call_operand.vmem [shape: f32[8,128], index: 3, kind: output, shape index: {}]  }
   0x1   :  { %v1344_v0 = vld [vmem:[%s2243_s0] sm:$0xff]  ;;  %1208 = vmatprep.subr.bf16.mxu0 %v1302_v1  ;;  %v26_v3 = vld [vmem:[%s2244_s1 + $0x8] sm:$0xff]  ;;  %1190 = vmatprep.mubr.msk.f32.mxu0 %vm1303_vm1, %v2247_v4  ;;  %vm1358_vm2 = vmpackc.low %vm29_vm0, %vm29_vm0  ;;  %s1308_s7 = smov 112   ;;  %s1309_s8 = smov 120   ;;  %vm971_vm6 = vcmask 64512   ;;  %vm975_vm7 = vcmask 130048  }
   0x2   :  { %v25_v2 = vld [vmem:[%s2244_s1] sm:$0xff]  ;;  %131 = vrot.lane.b32.xlu0 %v1344_v0, %s1305_s18  ;;  %v1365_v7 = vld [vmem:[%s2243_s0 + $0x8] sm:$0xff]  ;;  %1216 = vmatprep.subr.bf16.mxu1 %v1302_v1  ;;  %v1376_v8 = vld [vmem:[%s2243_s0 + $0x18] sm:$0xff]  ;;  %s1310_s9 = smov 72   ;;  %s1311_s10 = smov 48   ;;  %vm979_vm8 = vcmask 195584  }
   0x3   :  { %v1209_v5 = vpack.c.bf16 %v26_v3, %v25_v2  ;;  %2277 = vst [vmem:[#allocation2_spill] sm:$0xff] %v1365_v7  ;;  %146 = vrot.lane.b32.xlu1 %v1365_v7, %s1306_s21  ;;  %1205 = vmatprep.mubr.msk.f32.mxu1 %vm1303_vm1, %v2247_v4  ;;  %2278 = vst [vmem:[#allocation3_spill] sm:$0xff] %v1376_v8  ;;  %v27_v9 = vld [vmem:[%s2244_s1 + $0x10] sm:$0xff]  ;;  %v28_v10 = vld [vmem:[%s2244_s1 + $0x18] sm:$0xff]  ;;  %s1307_s1 = smov 104   ;;  %s1312_s11 = smov 24  }
   0x4   :  { %v1387_v11 = vld [vmem:[%s2243_s0 + $0x10] sm:$0xff]  ;;  %v1213_v12 = vpack.c.bf16 %v28_v10, %v27_v9  ;;  %v24_v13 = vld [vmem:[%s2243_s0 + $0x28] sm:$0xff]  ;;  %v1399_v14 = vld [vmem:[%s2243_s0 + $0x20] sm:$0xff]  ;;  %s1313_s12 = smov 56   ;;  %s1314_s13 = smov 40   ;;  %vm986_vm9 = vcmask 326656  }
   0x5   :  { %1211 = vmatpush3.bf16.xpose.msk.msra.mxu0 %vm1358_vm2, %v1209_v5  ;;  %s1315_s14 = smov 32   ;;  %s1316_s15 = smov 88   ;;  %vm990_vm10 = vcmask 392192   ;;  %vm994_vm11 = vcmask 457728   ;;  %vm998_vm12 = vcmask 523264   ;;  %vm1002_vm13 = vcmask 588800  }
   0x6   :  { %1212 = vmatprep.subr.bf16.mxu0 %v1302_v1  ;;  %133 = vrot.lane.b32.xlu0 %v1387_v11, %s1305_s18  ;;  %s1317_s16 = smov 80   ;;  %s1319_s17 = smov 16   ;;  %vm1006_vm14 = vcmask 654336   ;;  %vm1010_vm15 = vcmask 719872  }
   0x7   :  { %148 = vrot.lane.b32.xlu1 %v1376_v8, %s1306_s21  ;;  %s1320_s19 = smov 8  }
   0xa   :  { %135 = vrot.lane.b32.xlu0 %v1399_v14, %s1305_s18 }
   0xb   :  { %150 = vrot.lane.b32.xlu1 %v24_v13, %s1306_s21 }
   0xd   :  { %1215 = vmatpush3.bf16.xpose.msk.msra.mxu0 %vm1358_vm2, %v1213_v12  ;;  %vm1018_vm2 = vcmask 850944  }
   0xe   :  { %230 = vrot.lane.b32.xlu0 %v1344_v0, %s1307_s1 }
   0xf   :  { %232 = vrot.lane.b32.xlu1 %v1387_v11, %s1307_s1 }
  0x12   :  { %404 = vrot.lane.b32.xlu0 %v1344_v0, %s1308_s7 }
  0x13   :  { %406 = vrot.lane.b32.xlu1 %v1387_v11, %s1308_s7 }
  0x14   :  { %1191 = vmatmul.mubr.msk.f32.vlgmr.msra.gmra.mrb[0].mxu0 %vm29_vm0, %v1344_v0 }
  0x15   :  { %1193 = vmatprep.mubr.msk.f32.mxu0 %vm1303_vm1, %v2247_v4 }
  0x16   :  { %566 = vrot.lane.b32.xlu0 %v1344_v0, %s1309_s8 }
  0x17   :  { %568 = vrot.lane.b32.xlu1 %v1387_v11, %s1309_s8 }
  0x18   :  { %1194 = vmatmul.mubr.msk.f32.gmra.mrb[2].mxu0 %vm29_vm0, %v1387_v11 }
  0x19   :  { %1196 = vmatprep.mubr.msk.f32.mxu0 %vm1303_vm1, %v2247_v4  ;;  %vm1014_vm1 = vcmask 785408  }
  0x1a   :  { %284 = vrot.lane.b32.xlu0 %v1344_v0, %s1310_s9 }
  0x1b   :  { %286 = vrot.lane.b32.xlu1 %v1387_v11, %s1310_s9 }
  0x1c   :  { %1197 = vmatmul.mubr.msk.f32.gmra.mrb[4].mxu0 %vm29_vm0, %v1399_v14 }
  0x1e   :  { %458 = vrot.lane.b32.xlu0 %v1344_v0, %s1311_s10 }
  0x1f   :  { %460 = vrot.lane.b32.xlu1 %v1387_v11, %s1311_s10 }
  0x22   :  { %234 = vrot.lane.b32.xlu0 %v1399_v14, %s1307_s1 }
  0x23   :  { %620 = vrot.lane.b32.xlu1 %v1344_v0, %s1312_s11 }
  0x26   :  { %622 = vrot.lane.b32.xlu0 %v1387_v11, %s1312_s11 }
  0x27   :  { %408 = vrot.lane.b32.xlu1 %v1399_v14, %s1308_s7 }
  0x2a   :  { %485 = vrot.lane.b32.xlu0 %v1344_v0, %s1306_s21 }
  0x2b   :  { %487 = vrot.lane.b32.xlu1 %v1387_v11, %s1306_s21 }
  0x2e   :  { %328 = vrot.lane.b32.xlu0 %v1387_v11, %s1313_s12 }
  0x2f   :  { %326 = vrot.lane.b32.xlu1 %v1344_v0, %s1313_s12 }
  0x32   :  { %365 = vrot.lane.b32.xlu0 %v1344_v0, %s1314_s13 }
  0x33   :  { %570 = vrot.lane.b32.xlu1 %v1399_v14, %s1309_s8 }
  0x36   :  { %624 = vrot.lane.b32.xlu0 %v1399_v14, %s1312_s11 }
  0x37   :  { %288 = vrot.lane.b32.xlu1 %v1399_v14, %s1310_s9 }
  0x3a   :  { %330 = vrot.lane.b32.xlu0 %v1399_v14, %s1313_s12 }
  0x3b   :  { %462 = vrot.lane.b32.xlu1 %v1399_v14, %s1311_s10 }
  0x3e   :  { %685 = vrot.lane.b32.xlu0 %v1376_v8, %s1312_s11 }
  0x3f   :  { %367 = vrot.lane.b32.xlu1 %v1387_v11, %s1314_s13 }
  0x42   :  { %541 = vrot.lane.b32.xlu0 %v1387_v11, %s1315_s14 }
  0x43   :  { %489 = vrot.lane.b32.xlu1 %v1399_v14, %s1306_s21 }
  0x46   :  { %220 = vrot.lane.b32.xlu0 %v1387_v11, %s1316_s15 }
  0x47   :  { %683 = vrot.lane.b32.xlu1 %v1365_v7, %s1312_s11 }
  0x4a   :  { %392 = vrot.lane.b32.xlu0 %v1344_v0, %s1317_s16 }
  0x4b   :  { %539 = vrot.lane.b32.xlu1 %v1344_v0, %s1315_s14 }
  0x4e   :  { %687 = vrot.lane.b32.xlu0 %v24_v13, %s1312_s11 }
  0x4f   :  { %218 = vrot.lane.b32.xlu1 %v1344_v0, %s1316_s15 }
  0x52   :  { %222 = vrot.lane.b32.xlu0 %v1399_v14, %s1316_s15 }
  0x53   :  { %369 = vrot.lane.b32.xlu1 %v1399_v14, %s1314_s13 }
  0x57   :  { %394 = vrot.lane.b32.xlu1 %v1387_v11, %s1317_s16 }
  0x5b   :  { %543 = vrot.lane.b32.xlu1 %v1399_v14, %s1315_s14 }
  0x5f   :  { %396 = vrot.lane.b32.xlu1 %v1399_v14, %s1317_s16 }
  0x74   :  { %v1493_v15 = vpop.permute.xlu0 %131 }
  0x75   :  { %v140_v16 = vadd.f32 %v1493_v15, %v1344_v0  ;;  %v147_v17 = vpop.permute.xlu1 %146 }
  0x77   :  { %v1497_v18 = vadd.f32 %v147_v17, %v140_v16 }
  0x78   :  { %v1499_v19 = vpop.permute.xlu0 %133 }
  0x79   :  { %257 = vrot.lane.b32.xlu0 %v1497_v18, %s1310_s9  ;;  %v141_v20 = vadd.f32 %v1499_v19, %v1387_v11  ;;  %v149_v21 = vpop.permute.xlu1 %148 }
  0x7b   :  { %v1505_v22 = vadd.f32 %v149_v21, %v141_v20 }
  0x7c   :  { %v1507_v23 = vpop.permute.xlu0 %135 }
  0x7d   :  { %431 = vrot.lane.b32.xlu0 %v1497_v18, %s1317_s16  ;;  %259 = vrot.lane.b32.xlu1 %v1505_v22, %s1310_s9  ;;  %v142_v24 = vadd.f32 %v1507_v23, %v1399_v14  ;;  %v151_v25 = vpop.permute.xlu1 %150 }
  0x7f   :  { %v1519_v26 = vadd.f32 %v151_v25, %v142_v24 }
  0x80   :  { %v231_v31 = vpop.permute.xlu0 %230 }
  0x81   :  { %593 = vrot.lane.b32.xlu0 %v1497_v18, %s1316_s15  ;;  %433 = vrot.lane.b32.xlu1 %v1505_v22, %s1317_s16  ;;  %v1529_v27 = vpop.permute.xlu1 %232 }
  0x84   :  { %v405_v33 = vpop.permute.xlu0 %404 }
  0x85   :  { %595 = vrot.lane.b32.xlu1 %v1505_v22, %s1316_s15  ;;  %261 = vrot.lane.b32.xlu0 %v1519_v26, %s1310_s9  ;;  %v1531_v28 = vpop.permute.xlu1 %406 }
  0x88   :  { %v567_v35 = vpop.permute.xlu0 %566 }
  0x89   :  { %435 = vrot.lane.b32.xlu0 %v1519_v26, %s1317_s16  ;;  %v1533_v29 = vpop.permute.xlu1 %568 }
  0x8c   :  { %v285_v37 = vpop.permute.xlu0 %284 }
  0x8d   :  { %597 = vrot.lane.b32.xlu0 %v1519_v26, %s1316_s15  ;;  %v1535_v30 = vpop.permute.xlu1 %286 }
  0x90   :  { %v459_v39 = vpop.permute.xlu0 %458 }
  0x91   :  { %v1537_v32 = vpop.permute.xlu1 %460 }
  0x94   :  { %v1543_v41 = vpop.permute.xlu0 %234 }
  0x95   :  { %v621_v34 = vpop.permute.xlu1 %620 }
  0x98   :  { %v1547_v43 = vpop.permute.xlu0 %622 }
  0x99   :  { %v1539_v36 = vpop.permute.xlu1 %408 }
  0x9c   :  { %v486_v45 = vpop.permute.xlu0 %485 }
  0x9d   :  { %v1541_v38 = vpop.permute.xlu1 %487 }
  0xa0   :  { %v1561_v51 = vpop.permute.xlu0 %328 }
  0xa1   :  { %v327_v40 = vpop.permute.xlu1 %326 }
  0xa4   :  { %v366_v57 = vpop.permute.xlu0 %365 }
  0xa5   :  { %v1545_v42 = vpop.permute.xlu1 %570 }
  0xa8   :  { %v1592_v63 = vpop.permute.xlu0 %624 }
  0xa9   :  { %v1549_v44 = vpop.permute.xlu1 %288 }
  0xac   :  { %v1605_v3 = vpop.permute.xlu0 %330 }
  0xad   :  { %v1551_v46 = vpop.permute.xlu1 %462 }
  0xb0   :  { %v686_v12 = vpop.permute.xlu0 %685 }
  0xb1   :  { %v1575_v56 = vpop.permute.xlu1 %367 }
  0xb4   :  { %v542_v17 = vpop.permute.xlu0 %541 }
  0xb5   :  { %v1590_v62 = vpop.permute.xlu1 %489 }
  0xb8   :  { %v221_v21 = vpop.permute.xlu0 %220 }
  0xb9   :  { %v684_v2 = vpop.permute.xlu1 %683 }
  0xbd   :  { %v540_v6 = vpop.permute.xlu1 %539 }
  0xc1   :  { %v219_v16 = vpop.permute.xlu1 %218 }
  0xe7   :  { %v1553_v47 = vpop.f32.mrb[0].mxu0 }
  0xe8   :  { %2279 = vst [vmem:[#allocation4_spill] sm:$0xff] %v1553_v47  ;;  %v1192_v48 = vpop.f32.mrb[1].mxu0  ;;  %v1556_v49 = vmul.f32 %v621_v34, %v1553_v47  ;;  %v1559_v50 = vmul.f32 %v231_v31, %v1553_v47  ;;  %v1570_v53 = vmul.f32 %v285_v37, %v1553_v47  ;;  %v1573_v54 = vmul.f32 %v405_v33, %v1553_v47 }
  0xe9   :  { %v1584_v59 = vmul.f32 %v459_v39, %v1553_v47  ;;  %v575_v60 = vmul.f32 %v567_v35, %v1553_v47  ;;  %v1599_v1 = vmul.f32 %v366_v57, %v1553_v47  ;;  %v1608_v5 = vmul.f32 %v486_v45, %v1553_v47  ;;  %v1679_v35 = vpop.permute.xlu1 %369 }
  0xea   :  { %2280 = vst [vmem:[#allocation5_spill] sm:$0xff] %v1556_v49  ;;  %635 = vrot.lane.b32.xlu1 %v1556_v49, %s1309_s8  ;;  %245 = vrot.lane.b32.xlu0 %v1559_v50, %s1309_s8  ;;  %v1615_v9 = vmul.f32 %v540_v6, %v1553_v47  ;;  %v1618_v10 = vmul.f32 %v327_v40, %v1553_v47 }
  0xeb   :  { %v1567_v52 = vpop.f32.mrb[2].mxu0  ;;  %2283 = vst [vmem:[#allocation8_spill] sm:$0xff] %v1599_v1  ;;  %v1626_v13 = vmul.f32 %v1493_v15, %v1553_v47  ;;  %v1633_v20 = vmul.f32 %v219_v16, %v1553_v47  ;;  %v692_v24 = vmul.f32 %v684_v2, %v1553_v47 }
  0xec   :  { %2281 = vst [vmem:[#allocation6_spill] sm:$0xff] %v1567_v52  ;;  %v1195_v55 = vpop.f32.mrb[3].mxu0  ;;  %2284 = vst [vmem:[#allocation9_spill] sm:$0xff] %v1615_v9  ;;  %v1641_v15 = vmul.f32 %v1529_v27, %v1567_v52  ;;  %v1650_v25 = vmul.f32 %v1531_v28, %v1567_v52  ;;  %v393_v27 = vpop.permute.xlu0 %392  ;;  %v576_v33 = vmul.f32 %v1533_v29, %v1567_v52 }
  0xed   :  { %2285 = vst [vmem:[#allocation10_spill] sm:$0xff] %v1626_v13  ;;  %v1656_v31 = vmul.f32 %v393_v27, %v1553_v47  ;;  %v1665_v28 = vmul.f32 %v1547_v43, %v1567_v52  ;;  %v1669_v34 = vmul.f32 %v1535_v30, %v1567_v52  ;;  %v1677_v29 = vmul.f32 %v1537_v32, %v1567_v52  ;;  %v395_v32 = vpop.permute.xlu1 %394 }
  0xee   :  { %314 = vrot.lane.b32.xlu1 %v1570_v53, %s1308_s7  ;;  %419 = vrot.lane.b32.xlu0 %v1573_v54, %s1308_s7  ;;  %v1687_v30 = vmul.f32 %v1541_v38, %v1567_v52  ;;  %v1695_v37 = vmul.f32 %v1561_v51, %v1567_v52  ;;  %v1703_v38 = vmul.f32 %v1575_v56, %v1567_v52  ;;  %v1318_v43 = vmov 0  }
  0xef   :  { %v1581_v58 = vpop.f32.mrb[4].mxu0  ;;  %2286 = vst [vmem:[#allocation11_spill] sm:$0xff] %v1665_v28  ;;  %1240 = vset.pattern.permute.xlu1 %v1318_v43  ;;  %1239 = vset.pattern.permute.xlu0 %v1318_v43  ;;  %v1722_v51 = vmul.f32 %v542_v17, %v1567_v52  ;;  %v693_v55 = vmul.f32 %v686_v12, %v1567_v52 }
  0xf0   :  { %2282 = vst [vmem:[#allocation7_spill] sm:$0xff] %v1581_v58  ;;  %v1198_v61 = vpop.f32.mrb[5].mxu0  ;;  %2287 = vst [vmem:[#allocation12_spill] sm:$0xff] %v1703_v38  ;;  %v1705_v39 = vpop.permute.xlu0 %687  ;;  %v1731_v56 = vmul.f32 %v1499_v19, %v1567_v52  ;;  %v1740_v2 = vmul.f32 %v221_v21, %v1567_v52  ;;  %v1900_v7 = vmul.f32 %v1507_v23, %v1581_v58 }
  0xf1   :  { %v1707_v40 = vpop.permute.xlu1 %543  ;;  %2288 = vst [vmem:[#allocation13_spill] sm:$0xff] %v1722_v51  ;;  %v1737_v61 = vmul.f32 %v395_v32, %v1567_v52 }
  0xf2   :  { %512 = vrot.lane.b32.xlu1 %v1584_v59, %s1308_s7  ;;  %581 = vrot.lane.b32.xlu0 %v575_v60, %s1307_s1  ;;  %2289 = vst [vmem:[#allocation14_spill] sm:$0xff] %v1731_v56  ;;  %2299 = vst [vmem:[#allocation24_spill] sm:$0xff] %v1900_v7 }
  0xf4   :  { %v1717_v45 = vpop.permute.xlu0 %222 }
  0xf5   :  { %v1719_v48 = vpop.permute.xlu1 %396 }
  0xf6   :  { %659 = vrot.lane.b32.xlu1 %v1556_v49, %s1308_s7  ;;  %299 = vrot.lane.b32.xlu0 %v1570_v53, %s1309_s8 }
  0xf8   :  { %v258_v57 = vpop.permute.xlu0 %257 }
  0xf9   :  { %v260_v60 = vpop.permute.xlu1 %259  ;;  %v266_v12 = vmul.f32 %v258_v57, %v1553_v47  ;;  %v1764_v57 = vmul.f32 %v1543_v41, %v1581_v58  ;;  %v1778_v41 = vmul.f32 %v1549_v44, %v1581_v58  ;;  %v1793_v44 = vmul.f32 %v1590_v62, %v1581_v58 }
  0xfa   :  { %671 = vrot.lane.b32.xlu1 %v1599_v1, %s1308_s7  ;;  %473 = vrot.lane.b32.xlu0 %v1584_v59, %s1309_s8  ;;  %v267_v16 = vmul.f32 %v260_v60, %v1567_v52 }
  0xfb   :  { %2290 = vst [vmem:[#allocation15_spill] sm:$0xff] %v1778_v41  ;;  %2292 = vst [vmem:[#allocation17_spill] sm:$0xff] %v1793_v44 }
  0xfc   :  { %v432_v19 = vpop.permute.xlu0 %431 }
  0xfd   :  { %v434_v6 = vpop.permute.xlu1 %433  ;;  %v440_v17 = vmul.f32 %v432_v19, %v1553_v47 }
  0xfe   :  { %380 = vrot.lane.b32.xlu1 %v1599_v1, %s1307_s1  ;;  %500 = vrot.lane.b32.xlu0 %v1608_v5, %s1309_s8  ;;  %v441_v21 = vmul.f32 %v434_v6, %v1567_v52  ;;  %v577_v6 = vmul.f32 %v1545_v42, %v1581_v58  ;;  %v1786_v42 = vmul.f32 %v1551_v46, %v1581_v58 }
 0x100   :  { %2291 = vst [vmem:[#allocation16_spill] sm:$0xff] %v1786_v42 }
 0x101   :  { %v596_v27 = vpop.permute.xlu1 %595 }
 0x102   :  { %554 = vrot.lane.b32.xlu1 %v1615_v9, %s1307_s1  ;;  %647 = vrot.lane.b32.xlu0 %v1618_v10, %s1309_s8  ;;  %v603_v32 = vmul.f32 %v596_v27, %v1567_v52  ;;  %v1022_v9 = vld [vmem:[%s2245_s2] sm:$0xff] }
 0x106   :  { %341 = vrot.lane.b32.xlu0 %v1618_v10, %s1308_s7  ;;  %182 = vrot.lane.b32.xlu1 %v1626_v13, %s1309_s8 }
 0x10a   :  { %353 = vrot.lane.b32.xlu0 %v1570_v53, %s1307_s1  ;;  %719 = vrot.lane.b32.xlu1 %v1633_v20, %s1309_s8 }
 0x10e   :  { %527 = vrot.lane.b32.xlu0 %v1584_v59, %s1307_s1  ;;  %247 = vrot.lane.b32.xlu1 %v1641_v15, %s1309_s8 }
 0x112   :  { %698 = vrot.lane.b32.xlu0 %v692_v24, %s1307_s1  ;;  %421 = vrot.lane.b32.xlu1 %v1650_v25, %s1308_s7  ;;  %v594_v24 = vpop.permute.xlu0 %593 }
 0x116   :  { %734 = vrot.lane.b32.xlu0 %v1656_v31, %s1309_s8  ;;  %583 = vrot.lane.b32.xlu1 %v576_v33, %s1307_s1  ;;  %v602_v33 = vmul.f32 %v594_v24, %v1553_v47  ;;  %v262_v43 = vpop.permute.xlu0 %261  ;;  %v1809_v24 = vmul.f32 %v1605_v3, %v1581_v58  ;;  %v1918_v47 = vmul.f32 %v1717_v45, %v1581_v58 }
 0x117   :  { %v268_v19 = vmul.f32 %v262_v43, %v1581_v58 }
 0x118   :  { %2294 = vst [vmem:[#allocation19_spill] sm:$0xff] %v1809_v24 }
 0x11a   :  { %637 = vrot.lane.b32.xlu0 %v1665_v28, %s1309_s8  ;;  %301 = vrot.lane.b32.xlu1 %v1669_v34, %s1309_s8  ;;  %v436_v60 = vpop.permute.xlu0 %435 }
 0x11e   :  { %316 = vrot.lane.b32.xlu0 %v1669_v34, %s1308_s7  ;;  %475 = vrot.lane.b32.xlu1 %v1677_v29, %s1309_s8 }
 0x122   :  { %514 = vrot.lane.b32.xlu0 %v1677_v29, %s1308_s7  ;;  %502 = vrot.lane.b32.xlu1 %v1687_v30, %s1309_s8 }
 0x126   :  { %661 = vrot.lane.b32.xlu0 %v1665_v28, %s1308_s7  ;;  %649 = vrot.lane.b32.xlu1 %v1695_v37, %s1309_s8 }
 0x12a   :  { %673 = vrot.lane.b32.xlu0 %v1703_v38, %s1308_s7  ;;  %343 = vrot.lane.b32.xlu1 %v1695_v37, %s1308_s7 }
 0x12e   :  { %382 = vrot.lane.b32.xlu0 %v1703_v38, %s1307_s1  ;;  %355 = vrot.lane.b32.xlu1 %v1669_v34, %s1307_s1 }
 0x132   :  { %556 = vrot.lane.b32.xlu0 %v1722_v51, %s1307_s1  ;;  %529 = vrot.lane.b32.xlu1 %v1677_v29, %s1307_s1 }
 0x136   :  { %700 = vrot.lane.b32.xlu1 %v693_v55, %s1307_s1  ;;  %184 = vrot.lane.b32.xlu0 %v1731_v56, %s1309_s8  ;;  %v1760_v55 = vmul.f32 %v1539_v36, %v1581_v58  ;;  %v442_v36 = vmul.f32 %v436_v60, %v1581_v58 }
 0x13a   :  { %736 = vrot.lane.b32.xlu1 %v1737_v61, %s1309_s8  ;;  %721 = vrot.lane.b32.xlu0 %v1740_v2, %s1309_s8 }
 0x13e   :  { %274 = vrot.lane.b32.xlu1 %v267_v16, %s1309_s8  ;;  %272 = vrot.lane.b32.xlu0 %v266_v12, %s1309_s8  ;;  %v598_v12 = vpop.permute.xlu0 %597 }
 0x13f   :  { %v604_v16 = vmul.f32 %v598_v12, %v1581_v58 }
 0x142   :  { %448 = vrot.lane.b32.xlu1 %v441_v21, %s1308_s7  ;;  %446 = vrot.lane.b32.xlu0 %v440_v17, %s1308_s7  ;;  %v1797_v17 = vmul.f32 %v1592_v63, %v1581_v58 }
 0x144   :  { %2293 = vst [vmem:[#allocation18_spill] sm:$0xff] %v1797_v17 }
 0x146   :  { %610 = vrot.lane.b32.xlu1 %v603_v32, %s1307_s1  ;;  %608 = vrot.lane.b32.xlu0 %v602_v33, %s1307_s1  ;;  %v1833_v33 = vmul.f32 %v1679_v35, %v1581_v58 }
 0x148   :  { %2295 = vst [vmem:[#allocation20_spill] sm:$0xff] %v1833_v33 }
 0x14a   :  { %423 = vrot.lane.b32.xlu1 %v1760_v55, %s1308_s7  ;;  %249 = vrot.lane.b32.xlu0 %v1764_v57, %s1309_s8 }
 0x14e   :  { %585 = vrot.lane.b32.xlu1 %v577_v6, %s1307_s1  ;;  %276 = vrot.lane.b32.xlu0 %v268_v19, %s1309_s8  ;;  %v694_v6 = vmul.f32 %v1705_v39, %v1581_v58  ;;  %v1870_v39 = vmul.f32 %v1707_v40, %v1581_v58 }
 0x150   :  { %2297 = vst [vmem:[#allocation22_spill] sm:$0xff] %v1870_v39 }
 0x152   :  { %303 = vrot.lane.b32.xlu1 %v1778_v41, %s1309_s8  ;;  %450 = vrot.lane.b32.xlu0 %v442_v36, %s1308_s7 }
 0x156   :  { %477 = vrot.lane.b32.xlu1 %v1786_v42, %s1309_s8  ;;  %612 = vrot.lane.b32.xlu0 %v604_v16, %s1307_s1 }
 0x15a   :  { %504 = vrot.lane.b32.xlu1 %v1793_v44, %s1309_s8  ;;  %639 = vrot.lane.b32.xlu0 %v1797_v17, %s1309_s8 }
 0x15c   :  { %v1803_v46 = vpop.permute.xlu1 %635  ;;  %v1805_v21 = vpop.permute.xlu0 %245 }
 0x15d   :  { %v254_v38 = vadd.f32 %v1805_v21, %v1633_v20 }
 0x15e   :  { %651 = vrot.lane.b32.xlu1 %v1809_v24, %s1309_s8  ;;  %318 = vrot.lane.b32.xlu0 %v1778_v41, %s1308_s7 }
 0x160   :  { %v1815_v62 = vpop.permute.xlu1 %314  ;;  %v1817_v63 = vpop.permute.xlu0 %419 }
 0x162   :  { %345 = vrot.lane.b32.xlu1 %v1809_v24, %s1308_s7  ;;  %516 = vrot.lane.b32.xlu0 %v1786_v42, %s1308_s7 }
 0x164   :  { %v1823_v27 = vpop.permute.xlu1 %512  ;;  %v1825_v3 = vpop.permute.xlu0 %581 }
 0x166   :  { %357 = vrot.lane.b32.xlu1 %v1778_v41, %s1307_s1  ;;  %663 = vrot.lane.b32.xlu0 %v1797_v17, %s1308_s7 }
 0x168   :  { %v1835_v32 = vpop.permute.xlu1 %659  ;;  %v1837_v43 = vpop.permute.xlu0 %299 }
 0x16a   :  { %531 = vrot.lane.b32.xlu1 %v1786_v42, %s1307_s1  ;;  %675 = vrot.lane.b32.xlu0 %v1833_v33, %s1308_s7 }
 0x16c   :  { %v1843_v60 = vpop.permute.xlu1 %671  ;;  %v1845_v19 = vpop.permute.xlu0 %473 }
 0x16d   :  { %2296 = vst [vmem:[#allocation21_spill] sm:$0xff] %v1843_v60 }
 0x16e   :  { %702 = vrot.lane.b32.xlu1 %v694_v6, %s1307_s1  ;;  %384 = vrot.lane.b32.xlu0 %v1833_v33, %s1307_s1 }
 0x170   :  { %v1852_v35 = vpop.permute.xlu1 %380  ;;  %v1854_v36 = vpop.permute.xlu0 %500 }
 0x172   :  { %748 = vrot.lane.b32.xlu1 %v1641_v15, %s1308_s7  ;;  %746 = vrot.lane.b32.xlu0 %v1559_v50, %s1308_s7 }
 0x174   :  { %v1860_v12 = vpop.permute.xlu1 %554  ;;  %v1862_v16 = vpop.permute.xlu0 %647 }
 0x176   :  { %196 = vrot.lane.b32.xlu1 %v1731_v56, %s1308_s7  ;;  %194 = vrot.lane.b32.xlu0 %v1626_v13, %s1308_s7 }
 0x178   :  { %v1872_v6 = vpop.permute.xlu0 %341  ;;  %v1874_v4 = vpop.permute.xlu1 %182 }
 0x17a   :  { %773 = vrot.lane.b32.xlu1 %v1344_v0, %s1319_s17  ;;  %558 = vrot.lane.b32.xlu0 %v1870_v39, %s1307_s1 }
 0x17c   :  { %v1880_v17 = vpop.permute.xlu0 %353  ;;  %v1882_v33 = vpop.permute.xlu1 %719 }
 0x17e   :  { %761 = vrot.lane.b32.xlu1 %v1633_v20, %s1308_s7  ;;  %775 = vrot.lane.b32.xlu0 %v1387_v11, %s1319_s17  ;;  %v428_v20 = vadd.f32 %v1817_v63, %v1656_v31 }
 0x180   :  { %v1888_v40 = vpop.permute.xlu0 %527  ;;  %v248_v42 = vpop.permute.xlu1 %247 }
 0x181   :  { %v255_v41 = vadd.f32 %v248_v42, %v1740_v2 }
 0x182   :  { %797 = vrot.lane.b32.xlu1 %v1344_v0, %s1320_s19  ;;  %763 = vrot.lane.b32.xlu0 %v1740_v2, %s1308_s7 }
 0x184   :  { %v1894_v39 = vpop.permute.xlu0 %698  ;;  %v1896_v8 = vpop.permute.xlu1 %421 }
 0x185   :  { %2298 = vst [vmem:[#allocation23_spill] sm:$0xff] %v1894_v39 }
 0x186   :  { %799 = vrot.lane.b32.xlu0 %v1387_v11, %s1320_s19  ;;  %186 = vrot.lane.b32.xlu1 %v1900_v7, %s1309_s8 }
 0x188   :  { %v1906_v24 = vpop.permute.xlu0 %734  ;;  %v1908_v0 = vpop.permute.xlu1 %583 }
 0x189   :  { %v743_v31 = vadd.f32 %v1906_v24, %v1584_v59  ;;  %v591_v21 = vadd.f32 %v1908_v0, %v1669_v34 }
 0x18a   :  { %785 = vrot.lane.b32.xlu0 %v1573_v54, %s1307_s1  ;;  %787 = vrot.lane.b32.xlu1 %v1650_v25, %s1307_s1  ;;  %v1934_v54 = vmul.f32 %v1719_v48, %v1581_v58 }
 0x18c   :  { %v1914_v52 = vpop.permute.xlu0 %637  ;;  %v302_v23 = vpop.permute.xlu1 %301 }
 0x18e   :  { %723 = vrot.lane.b32.xlu0 %v1918_v47, %s1309_s8  ;;  %809 = vrot.lane.b32.xlu1 %v1559_v50, %s1307_s1 }
 0x190   :  { %v1924_v11 = vpop.permute.xlu0 %316  ;;  %v1926_v44 = vpop.permute.xlu1 %475 }
 0x192   :  { %811 = vrot.lane.b32.xlu0 %v1641_v15, %s1307_s1  ;;  %206 = vrot.lane.b32.xlu1 %v1626_v13, %s1307_s1 }
 0x194   :  { %v1936_v25 = vpop.permute.xlu0 %514  ;;  %v1938_v45 = vpop.permute.xlu1 %502 }
 0x196   :  { %208 = vrot.lane.b32.xlu0 %v1731_v56, %s1307_s1  ;;  %738 = vrot.lane.b32.xlu1 %v1934_v54, %s1309_s8 }
 0x198   :  { %v1944_v50 = vpop.permute.xlu0 %661  ;;  %v1946_v15 = vpop.permute.xlu1 %649 }
 0x19a   :  { %750 = vrot.lane.b32.xlu0 %v1764_v57, %s1308_s7  ;;  %198 = vrot.lane.b32.xlu1 %v1900_v7, %s1308_s7 }
 0x19c   :  { %v1952_v48 = vpop.permute.xlu0 %673  ;;  %v344_v13 = vpop.permute.xlu1 %343 }
 0x19d   :  { %2300 = vst [vmem:[#allocation25_spill] sm:$0xff] %v1952_v48 }
 0x19e   :  { %777 = vrot.lane.b32.xlu0 %v1399_v14, %s1319_s17  ;;  %765 = vrot.lane.b32.xlu1 %v1918_v47, %s1308_s7 }
 0x1a0   :  { %v1958_v56 = vpop.permute.xlu0 %382  ;;  %v1960_v58 = vpop.permute.xlu1 %355 }
 0x1a2   :  { %801 = vrot.lane.b32.xlu0 %v1399_v14, %s1320_s19  ;;  %789 = vrot.lane.b32.xlu1 %v1760_v55, %s1307_s1  ;;  %v1023_v14 = vld [vmem:[%s2245_s2 + $0x8] sm:$0xff] }
 0x1a4   :  { %v1966_v28 = vpop.permute.xlu0 %556  ;;  %v1968_v49 = vpop.permute.xlu1 %529 }
 0x1a5   :  { %2301 = vst [vmem:[#allocation26_spill] sm:$0xff] %v1966_v28  ;;  %v713_v28 = vadd.f32 %v1608_v5, %v1874_v4 }
 0x1a6   :  { %813 = vrot.lane.b32.xlu0 %v1764_v57, %s1307_s1  ;;  %210 = vrot.lane.b32.xlu1 %v1900_v7, %s1307_s1  ;;  %v1024_v57 = vld [vmem:[%s2245_s2 + $0x10] sm:$0xff] }
 0x1a8   :  { %v1980_v51 = vpop.permute.xlu1 %700  ;;  %v1982_v55 = vpop.permute.xlu0 %184 }
 0x1a9   :  { %2302 = vst [vmem:[#allocation27_spill] sm:$0xff] %v1980_v51  ;;  %v714_v39 = vadd.f32 %v1687_v30, %v1982_v55 }
 0x1aa   :  { %1028 = vperm.xlu0 %1239, %v1022_v9   ;;  %1031 = vperm.xlu1 %1240, %v1023_v14  }
 0x1ac   :  { %v737_v1 = vpop.permute.xlu1 %736  ;;  %v722_v7 = vpop.permute.xlu0 %721 }
 0x1ad   :  { %v729_v9 = vadd.f32 %v722_v7, %v1695_v37  ;;  %v429_v7 = vadd.f32 %v1896_v8, %v1737_v61  ;;  %v744_v5 = vadd.f32 %v737_v1, %v1677_v29  ;;  %v590_v61 = vadd.f32 %v1825_v3, %v1570_v53 }
 0x1ae   :  { %164 = vrot.lane.b32.xlu0 %v1497_v18, %s1306_s21  ;;  %1034 = vperm.xlu1 %1240, %v1024_v57   ;;  %v728_v18 = vadd.f32 %v1882_v33, %v1618_v10 }
 0x1af   :  { %v1251_v63 = vpack.i.bf16 %v744_v5, %v743_v31 }
 0x1b0   :  { %v275_v14 = vpop.permute.xlu1 %274  ;;  %v273_v51 = vpop.permute.xlu0 %272 }
 0x1b1   :  { %v282_v60 = vadd.f32 %v275_v14, %v255_v41  ;;  %v281_v48 = vadd.f32 %v273_v51, %v254_v38  ;;  %v1241_v38 = vpack.i.bf16 %v714_v39, %v713_v28  ;;  %v1246_v51 = vpack.i.bf16 %v729_v9, %v728_v18  ;;  %v2303_v14 = vld [vmem:[#allocation26_spill] sm:$0xff]  ;;  %v2304_v18 = vld [vmem:[#allocation25_spill] sm:$0xff] }
 0x1b2   :  { %168 = vrot.lane.b32.xlu0 %v1519_v26, %s1306_s21  ;;  %166 = vrot.lane.b32.xlu1 %v1505_v22, %s1306_s21 }
 0x1b3   :  { %v309_v30 = vadd.f32 %v302_v23, %v282_v60  ;;  %v308_v37 = vadd.f32 %v1837_v43, %v281_v48 }
 0x1b4   :  { %v449_v10 = vpop.permute.xlu1 %448  ;;  %v447_v2 = vpop.permute.xlu0 %446 }
 0x1b5   :  { %v312_v41 = vadd.f32 %v309_v30, %v302_v23  ;;  %v311_v26 = vadd.f32 %v308_v37, %v1837_v43  ;;  %v456_v42 = vadd.f32 %v449_v10, %v429_v7  ;;  %v455_v22 = vadd.f32 %v447_v2, %v428_v20  ;;  %v2305_v20 = vld [vmem:[#allocation21_spill] sm:$0xff]  ;;  %v2307_v30 = vld [vmem:[#allocation23_spill] sm:$0xff] }
 0x1b6   :  { %1242 = vrot.lane.b32.xlu0 %v1241_v38, %s1315_s14  ;;  %1247 = vrot.lane.b32.xlu1 %v1246_v51, %s1314_s13 }
 0x1b7   :  { %v324_v8 = vadd.f32 %v1924_v11, %v312_v41  ;;  %v323_v28 = vadd.f32 %v1815_v62, %v311_v26  ;;  %v483_v1 = vadd.f32 %v1926_v44, %v456_v42  ;;  %v482_v29 = vadd.f32 %v1845_v19, %v455_v22  ;;  %v2308_v41 = vld [vmem:[#allocation15_spill] sm:$0xff] }
 0x1b8   :  { %v611_v59 = vpop.permute.xlu1 %610  ;;  %v609_v24 = vpop.permute.xlu0 %608 }
 0x1b9   :  { %v351_v33 = vadd.f32 %v344_v13, %v324_v8  ;;  %v350_v43 = vadd.f32 %v1872_v6, %v323_v28  ;;  %v510_v60 = vadd.f32 %v1938_v45, %v483_v1  ;;  %v509_v62 = vadd.f32 %v1854_v36, %v482_v29 }
 0x1ba   :  { %v618_v39 = vadd.f32 %v611_v59, %v591_v21  ;;  %v617_v44 = vadd.f32 %v609_v24, %v590_v61  ;;  %1252 = vrot.lane.b32.xlu0 %v1251_v63, %s1311_s10 }
 0x1bb   :  { %v363_v19 = vadd.f32 %v1960_v58, %v351_v33  ;;  %v362_v53 = vadd.f32 %v1880_v17, %v350_v43  ;;  %v522_v34 = vadd.f32 %v1936_v25, %v510_v60  ;;  %v521_v3 = vadd.f32 %v1823_v27, %v509_v62 }
 0x1bc   :  { %v645_v13 = vadd.f32 %v1914_v52, %v618_v39  ;;  %v644_v6 = vadd.f32 %v1803_v46, %v617_v44  ;;  %v424_v0 = vpop.permute.xlu1 %423  ;;  %v250_v23 = vpop.permute.xlu0 %249 }
 0x1bd   :  { %v525_v36 = vadd.f32 %v522_v34, %v1936_v25  ;;  %v524_v11 = vadd.f32 %v521_v3, %v1823_v27  ;;  %v430_v45 = vadd.f32 %v424_v0, %v1934_v54  ;;  %v256_v58 = vadd.f32 %v250_v23, %v1918_v47 }
 0x1be   :  { %v657_v17 = vadd.f32 %v1946_v15, %v645_v13  ;;  %v656_v48 = vadd.f32 %v1862_v16, %v644_v6  ;;  %v2039_v57 = vadd.f32 %v1852_v35, %v362_v53  ;;  %v2042_v52 = vadd.f32 %v1958_v56, %v363_v19 }
 0x1bf   :  { %v537_v46 = vadd.f32 %v1968_v49, %v525_v36  ;;  %v536_v25 = vadd.f32 %v1888_v40, %v524_v11 }
 0x1c0   :  { %v669_v27 = vadd.f32 %v1944_v50, %v657_v17  ;;  %v668_v54 = vadd.f32 %v1835_v32, %v656_v48  ;;  %v586_v9 = vpop.permute.xlu1 %585  ;;  %v277_v47 = vpop.permute.xlu0 %276  ;;  %v1281_v15 = vpack.i.bf16 %v2042_v52, %v2039_v57  ;;  %v2306_v32 = vld [vmem:[#allocation27_spill] sm:$0xff] }
 0x1c1   :  { %v283_v16 = vadd.f32 %v277_v47, %v256_v58  ;;  %v2051_v35 = vadd.f32 %v1860_v12, %v536_v25  ;;  %v2054_v56 = vadd.f32 %v2303_v14, %v537_v46  ;;  %v592_v26 = vadd.f32 %v586_v9, %v2308_v41  ;;  %v2310_v9 = vld [vmem:[#allocation8_spill] sm:$0xff]  ;;  %v2313_v41 = vld [vmem:[#allocation5_spill] sm:$0xff] }
 0x1c2   :  { %v681_v49 = vadd.f32 %v2304_v18, %v669_v27  ;;  %v680_v40 = vadd.f32 %v2305_v20, %v668_v54  ;;  %v2309_v27 = vld [vmem:[#allocation12_spill] sm:$0xff] }
 0x1c3   :  { %v1286_v50 = vpack.i.bf16 %v2054_v56, %v2051_v35  ;;  %v2325_v56 = vld [vmem:[#allocation18_spill] sm:$0xff] }
 0x1c4   :  { %v708_v7 = vadd.f32 %v2306_v32, %v681_v49  ;;  %v707_v37 = vadd.f32 %v2307_v30, %v680_v40  ;;  %v304_v38 = vpop.permute.xlu1 %303  ;;  %v451_v5 = vpop.permute.xlu0 %450  ;;  %v2311_v49 = vld [vmem:[#allocation13_spill] sm:$0xff] }
 0x1c5   :  { %v310_v51 = vadd.f32 %v304_v38, %v283_v16  ;;  %v457_v10 = vadd.f32 %v451_v5, %v430_v45  ;;  %v2312_v40 = vld [vmem:[#allocation9_spill] sm:$0xff] }
 0x1c6   :  { %v2063_v12 = vadd.f32 %v707_v37, %v2307_v30  ;;  %v2066_v2 = vadd.f32 %v708_v7, %v2306_v32 }
 0x1c7   :  { %v313_v42 = vadd.f32 %v310_v51, %v304_v38 }
 0x1c8   :  { %v478_v22 = vpop.permute.xlu1 %477  ;;  %v613_v31 = vpop.permute.xlu0 %612  ;;  %v1296_v8 = vpack.i.bf16 %v2066_v2, %v2063_v12 }
 0x1c9   :  { %v484_v28 = vadd.f32 %v478_v22, %v457_v10  ;;  %v619_v1 = vadd.f32 %v613_v31, %v592_v26 }
 0x1cc   :  { %v505_v29 = vpop.permute.xlu1 %504  ;;  %v640_v61 = vpop.permute.xlu0 %639 }
 0x1cd   :  { %v511_v21 = vadd.f32 %v505_v29, %v484_v28  ;;  %v646_v63 = vadd.f32 %v640_v61, %v619_v1  ;;  %v2315_v29 = vld [vmem:[#allocation17_spill] sm:$0xff] }
 0x1d0   :  { %v652_v59 = vpop.permute.xlu1 %651  ;;  %v319_v24 = vpop.permute.xlu0 %318 }
 0x1d1   :  { %v658_v33 = vadd.f32 %v652_v59, %v646_v63  ;;  %v325_v43 = vadd.f32 %v319_v24, %v313_v42  ;;  %v2314_v42 = vld [vmem:[#allocation11_spill] sm:$0xff]  ;;  %v2317_v59 = vld [vmem:[#allocation6_spill] sm:$0xff] }
 0x1d4   :  { %v346_v60 = vpop.permute.xlu1 %345  ;;  %v517_v62 = vpop.permute.xlu0 %516 }
 0x1d5   :  { %v352_v39 = vadd.f32 %v346_v60, %v325_v43  ;;  %v523_v44 = vadd.f32 %v517_v62, %v511_v21  ;;  %v2316_v21 = vld [vmem:[#allocation4_spill] sm:$0xff] }
 0x1d7   :  { %v526_v19 = vadd.f32 %v523_v44, %v517_v62 }
 0x1d8   :  { %v358_v53 = vpop.permute.xlu1 %357  ;;  %v664_v34 = vpop.permute.xlu0 %663 }
 0x1d9   :  { %v364_v3 = vadd.f32 %v358_v53, %v352_v39  ;;  %v670_v13 = vadd.f32 %v664_v34, %v658_v33  ;;  %v2318_v53 = vld [vmem:[#allocation19_spill] sm:$0xff] }
 0x1dc   :  { %v532_v6 = vpop.permute.xlu1 %531  ;;  %v676_v0 = vpop.permute.xlu0 %675 }
 0x1dd   :  { %v2071_v23 = vadd.f32 %v532_v6, %v526_v19  ;;  %v682_v36 = vadd.f32 %v676_v0, %v670_v13 }
 0x1e0   :  { %v703_v11 = vpop.permute.xlu1 %702  ;;  %v385_v45 = vpop.permute.xlu0 %384 }
 0x1e1   :  { %v709_v58 = vadd.f32 %v703_v11, %v682_v36  ;;  %v2073_v17 = vadd.f32 %v385_v45, %v364_v3 }
 0x1e3   :  { %v2075_v48 = vadd.f32 %v709_v58, %v703_v11  ;;  %v2319_v58 = vld [vmem:[#allocation2_spill] sm:$0xff] }
 0x1e4   :  { %v749_v46 = vpop.permute.xlu1 %748  ;;  %v747_v25 = vpop.permute.xlu0 %746 }
 0x1e5   :  { %v756_v54 = vadd.f32 %v749_v46, %v2309_v27  ;;  %v755_v47 = vadd.f32 %v747_v25, %v2310_v9  ;;  %v821_v46 = vmul.f32 %v2316_v21, %v2319_v58  ;;  %v2320_v25 = vld [vmem:[#allocation3_spill] sm:$0xff]  ;;  %v1025_v58 = vlaneseq }
 0x1e6   :  { %v822_v27 = vmul.f32 %v2317_v59, %v2320_v25 }
 0x1e7   :  { %v1256_v16 = vpack.i.bf16 %v756_v54, %v755_v47 }
 0x1e8   :  { %v2079_v14 = vpop.permute.xlu1 %196  ;;  %v2081_v18 = vpop.permute.xlu0 %194 }
 0x1e9   :  { %v759_v20 = vadd.f32 %v2311_v49, %v2079_v14  ;;  %v758_v32 = vadd.f32 %v2312_v40, %v2081_v18  ;;  %1257 = vrot.lane.b32.xlu0 %v1256_v16, %s1313_s12  ;;  %v2321_v49 = vld [vmem:[#allocation16_spill] sm:$0xff] }
 0x1eb   :  { %v1261_v7 = vpack.i.bf16 %v759_v20, %v758_v32 }
 0x1ec   :  { %v774_v30 = vpop.permute.xlu1 %773  ;;  %v2088_v37 = vpop.permute.xlu0 %558 }
 0x1ed   :  { %1262 = vrot.lane.b32.xlu0 %v1261_v7, %s1306_s21  ;;  %v782_v63 = vmul.f32 %v774_v30, %v2316_v21 }
 0x1f0   :  { %v762_v38 = vpop.permute.xlu1 %761  ;;  %v776_v5 = vpop.permute.xlu0 %775 }
 0x1f1   :  { %v770_v26 = vadd.f32 %v762_v38, %v2313_v41  ;;  %v783_v24 = vmul.f32 %v776_v5, %v2317_v59  ;;  %v2322_v5 = vld [vmem:[#allocation20_spill] sm:$0xff] }
 0x1f4   :  { %v798_v51 = vpop.permute.xlu1 %797  ;;  %v764_v10 = vpop.permute.xlu0 %763 }
 0x1f5   :  { %v771_v22 = vadd.f32 %v764_v10, %v2314_v42  ;;  %v806_v3 = vmul.f32 %v798_v51, %v2316_v21  ;;  %v2323_v10 = vld [vmem:[#allocation22_spill] sm:$0xff] }
 0x1f7   :  { %v1266_v31 = vpack.i.bf16 %v771_v22, %v770_v26  ;;  %v2324_v22 = vld [vmem:[#allocation7_spill] sm:$0xff] }
 0x1f8   :  { %v800_v28 = vpop.permute.xlu0 %799  ;;  %v2093_v1 = vpop.permute.xlu1 %186 }
 0x1f9   :  { %v715_v61 = vadd.f32 %v2315_v29, %v2093_v1  ;;  %1267 = vrot.lane.b32.xlu0 %v1266_v31, %s1310_s9  ;;  %v807_v13 = vmul.f32 %v800_v28, %v2317_v59  ;;  %v1301_v29 = vld [vmem:[%s2243_s0 + $0x28] sm:$0xff] }
 0x1fb   :  { %870 = vrot.lane.b32.xlu1 %v715_v61, %s1315_s14  ;;  %v823_v61 = vmul.f32 %v1301_v29, %v2324_v22 }
 0x1fc   :  { %v786_v33 = vpop.permute.xlu0 %785  ;;  %v788_v43 = vpop.permute.xlu1 %787 }
 0x1fd   :  { %v794_v60 = vadd.f32 %v786_v33, %v782_v63  ;;  %v795_v62 = vadd.f32 %v788_v43, %v783_v24  ;;  %v565_v24 = vadd.f32 %v2088_v37, %v2071_v23 }
 0x1ff   :  { %v1271_v39 = vpack.i.bf16 %v795_v62, %v794_v60 }
 0x200   :  { %v724_v44 = vpop.permute.xlu0 %723  ;;  %v810_v19 = vpop.permute.xlu1 %809 }
 0x201   :  { %v730_v34 = vadd.f32 %v724_v44, %v2318_v53  ;;  %1272 = vrot.lane.b32.xlu0 %v1271_v39, %s1317_s16  ;;  %v818_v36 = vadd.f32 %v810_v19, %v806_v3  ;;  %v2326_v44 = vld [vmem:[#allocation10_spill] sm:$0xff]  ;;  %v2327_v53 = vld [vmem:[#allocation24_spill] sm:$0xff] }
 0x202   :  { %v2328_v3 = vld [vmem:[#allocation14_spill] sm:$0xff] }
 0x203   :  { %882 = vrot.lane.b32.xlu1 %v730_v34, %s1314_s13 }
 0x204   :  { %v812_v6 = vpop.permute.xlu0 %811  ;;  %v207_v0 = vpop.permute.xlu1 %206 }
 0x205   :  { %v819_v11 = vadd.f32 %v812_v6, %v807_v13  ;;  %v824_v47 = vadd.f32 %v821_v46, %v207_v0  ;;  %v1026_v46 = vand.u32 127, %v1025_v58 }
 0x207   :  { %v1276_v45 = vpack.i.bf16 %v819_v11, %v818_v36 }
 0x208   :  { %v209_v54 = vpop.permute.xlu0 %208  ;;  %v739_v9 = vpop.permute.xlu1 %738 }
 0x209   :  { %v825_v16 = vadd.f32 %v822_v27, %v209_v54  ;;  %v745_v20 = vadd.f32 %v739_v9, %v2321_v49  ;;  %1277 = vrot.lane.b32.xlu0 %v1276_v45, %s1316_s15 }
 0x20b   :  { %v1291_v40 = vpack.i.bf16 %v825_v16, %v824_v47  ;;  %894 = vrot.lane.b32.xlu1 %v745_v20, %s1311_s10 }
 0x20c   :  { %v751_v32 = vpop.permute.xlu0 %750  ;;  %v199_v7 = vpop.permute.xlu1 %198 }
 0x20d   :  { %1287 = vrot.lane.b32.xlu0 %v1286_v50, %s1319_s17  ;;  %v757_v51 = vadd.f32 %v751_v32, %v2322_v5  ;;  %v760_v41 = vadd.f32 %v2323_v10, %v199_v7 }
 0x20f   :  { %1282 = vrot.lane.b32.xlu1 %v1281_v15, %s1320_s19 }
 0x210   :  { %v778_v30 = vpop.permute.xlu0 %777  ;;  %v766_v38 = vpop.permute.xlu1 %765 }
 0x211   :  { %1292 = vrot.lane.b32.xlu0 %v1291_v40, %s1305_s18  ;;  %v784_v35 = vmul.f32 %v778_v30, %v2324_v22  ;;  %v772_v50 = vadd.f32 %v766_v38, %v2325_v56 }
 0x213   :  { %906 = vrot.lane.b32.xlu1 %v757_v51, %s1313_s12 }
 0x214   :  { %v802_v26 = vpop.permute.xlu0 %801  ;;  %v790_v42 = vpop.permute.xlu1 %789 }
 0x215   :  { %918 = vrot.lane.b32.xlu0 %v760_v41, %s1306_s21  ;;  %v808_v57 = vmul.f32 %v802_v26, %v2324_v22  ;;  %v796_v52 = vadd.f32 %v790_v42, %v784_v35 }
 0x217   :  { %930 = vrot.lane.b32.xlu1 %v772_v50, %s1310_s9 }
 0x218   :  { %v814_v15 = vpop.permute.xlu0 %813  ;;  %v211_v31 = vpop.permute.xlu1 %210 }
 0x219   :  { %v820_v28 = vadd.f32 %v814_v15, %v808_v57  ;;  %942 = vrot.lane.b32.xlu0 %v796_v52, %s1317_s16  ;;  %v826_v63 = vadd.f32 %v823_v61, %v211_v31 }
 0x21b   :  { %954 = vrot.lane.b32.xlu1 %v820_v28, %s1316_s15 }
 0x21d   :  { %966 = vrot.lane.b32.xlu0 %v826_v63, %s1305_s18 }
 0x21f   :  { %1297 = vrot.lane.b32.xlu1 %v1296_v8, %s1312_s11 }
 0x223   :  { %834 = vrot.lane.b32.xlu1 %v2073_v17, %s1320_s19 }
 0x227   :  { %846 = vrot.lane.b32.xlu1 %v565_v24, %s1319_s17 }
 0x229   :  { %v1029_v33 = vpop.permute.xlu0 %1028  ;;  %v1032_v43 = vpop.permute.xlu1 %1031 }
 0x22a   :  { %vm1036_vm3 = vcmp.eq.s32.totalorder %v1026_v46, %v1029_v33  ;;  %vm1037_vm4 = vcmp.eq.s32.totalorder %v1026_v46, %v1032_v43 }
 0x22b   :  { %858 = vrot.lane.b32.xlu1 %v2075_v48, %s1312_s11 }
 0x22d   :  { %v165_v60 = vpop.permute.xlu0 %164  ;;  %v1035_v62 = vpop.permute.xlu1 %1034 }
 0x22e   :  { %v173_v39 = vmul.f32 %v165_v60, %v2316_v21  ;;  %vm1038_vm5 = vcmp.eq.s32.totalorder %v1026_v46, %v1035_v62 }
 0x230   :  { %v176_v12 = vadd.f32 %v173_v39, %v2326_v44 }
 0x231   :  { %v169_v2 = vpop.permute.xlu0 %168  ;;  %v167_v8 = vpop.permute.xlu1 %166 }
 0x232   :  { %v191_v17 = vadd.f32 %v1874_v4, %v176_v12  ;;  %v175_v19 = vmul.f32 %v169_v2, %v2324_v22  ;;  %v174_v23 = vmul.f32 %v167_v8, %v2317_v59  ;;  %v2329_v59 = vmov 0.0  }
 0x233   :  { %v1165_v25 = vsel %vm1037_vm4, 1.0, %v2329_v59 }
 0x234   :  { %v203_v37 = vadd.f32 %v2081_v18, %v191_v17  ;;  %v178_v34 = vadd.f32 %v175_v19, %v2327_v53  ;;  %v177_v48 = vadd.f32 %v174_v23, %v2328_v3  ;;  %v1164_v18 = vsel %vm1036_vm3, 1.0, %v2329_v59  ;;  %vm1218_vm3 = vmpackc.low %vm1018_vm2, %vm1018_vm2 }
 0x236   :  { %v215_v13 = vadd.f32 %v207_v0, %v203_v37  ;;  %v193_v6 = vadd.f32 %v2093_v1, %v178_v34  ;;  %v192_v21 = vadd.f32 %v1982_v55, %v177_v48  ;;  %v1166_v1 = vsel %vm1038_vm5, 1.0, %v2329_v59  ;;  %v1243_v55 = vpop.permute.xlu0 %1242  ;;  %v1248_v0 = vpop.permute.xlu1 %1247 }
 0x237   :  { %v1245_v57 = vunpack.i.h.bf16 %v1243_v55  ;;  %v1244_v52 = vunpack.i.l.bf16 %v1243_v55  ;;  %v1250_v28 = vunpack.i.h.bf16 %v1248_v0  ;;  %v1249_v29 = vunpack.i.l.bf16 %v1248_v0 }
 0x238   :  { %v205_v36 = vadd.f32 %v199_v7, %v193_v6  ;;  %v204_v11 = vadd.f32 %v2079_v14, %v192_v21 }
 0x23a   :  { %v216_v45 = vadd.f32 %v209_v54, %v204_v11  ;;  %v2159_v4 = vadd.f32 %v211_v31, %v205_v36  ;;  %v1253_v14 = vpop.permute.xlu0 %1252 }
 0x23b   :  { %v1255_v33 = vunpack.i.h.bf16 %v1253_v14  ;;  %v1254_v43 = vunpack.i.l.bf16 %v1253_v14 }
 0x254   :  { %1046 = vxpose.xlu1.b32.start [1/3] (short) (narrow) %v1164_v18, 8 }
 0x258   :  { %1047 = vxpose.xlu1.b32.cont [2/3] (short) (narrow) %v1165_v25, 8 }
 0x25b   :  { %v1258_v54 = vpop.permute.xlu0 %1257 }
 0x25c   :  { %1048 = vxpose.xlu1.b32.end [3/3] (short) (narrow) %v1166_v1, 8  ;;  %v1260_v44 = vunpack.i.h.bf16 %v1258_v54  ;;  %v1259_v12 = vunpack.i.l.bf16 %v1258_v54 }
 0x25f   :  { %v2168_v47 = vpop.permute.xlu0 %1262 }
 0x260   :  { %v1265_v17 = vunpack.i.h.bf16 %v2168_v47  ;;  %v1264_v19 = vunpack.i.l.bf16 %v2168_v47 }
 0x26b   :  { %v2172_v49 = vpop.permute.xlu0 %1267 }
 0x26c   :  { %v1270_v53 = vunpack.i.h.bf16 %v2172_v49  ;;  %v1269_v34 = vunpack.i.l.bf16 %v2172_v49 }
 0x26d   :  { %v2164_v27 = vpop.permute.xlu1 %870 }
 0x273   :  { %v2174_v40 = vpop.permute.xlu0 %1272 }
 0x274   :  { %v1274_v6 = vunpack.i.l.bf16 %v2174_v40 }
 0x275   :  { %v2166_v9 = vpop.permute.xlu1 %882 }
 0x27b   :  { %v2178_v7 = vpop.permute.xlu0 %1277 }
 0x27c   :  { %v1279_v58 = vunpack.i.l.bf16 %v2178_v7 }
 0x27d   :  { %v2170_v16 = vpop.permute.xlu1 %894 }
 0x27f   :  { %v1288_v10 = vpop.permute.xlu0 %1287 }
 0x280   :  { %v1290_v42 = vunpack.i.h.bf16 %v1288_v10  ;;  %v1289_v22 = vunpack.i.l.bf16 %v1288_v10 }
 0x281   :  { %v1283_v20 = vpop.permute.xlu1 %1282 }
 0x282   :  { %v1285_v38 = vunpack.i.h.bf16 %v1283_v20  ;;  %v1284_v5 = vunpack.i.l.bf16 %v1283_v20 }
 0x283   :  { %v1293_v61 = vpop.permute.xlu0 %1292 }
 0x284   :  { %v972_v41 = vsel %vm971_vm6, %v215_v13, %v1284_v5  ;;  %v973_v26 = vsel %vm971_vm6, %v216_v45, %v1285_v38  ;;  %v1275_v13 = vunpack.i.h.bf16 %v2174_v40  ;;  %v1280_v45 = vunpack.i.h.bf16 %v2178_v7 }
 0x285   :  { %v2176_v32 = vpop.permute.xlu1 %906  ;;  %v976_v15 = vsel %vm975_vm7, %v972_v41, %v1289_v22  ;;  %v977_v31 = vsel %vm975_vm7, %v973_v26, %v1290_v42  ;;  %v1295_v1 = vunpack.i.h.bf16 %v1293_v61  ;;  %v1294_v55 = vunpack.i.l.bf16 %v1293_v61 }
 0x287   :  { %v919_v46 = vpop.permute.xlu0 %918 }
 0x289   :  { %v2180_v30 = vpop.permute.xlu1 %930 }
 0x28b   :  { %v943_v41 = vpop.permute.xlu0 %942 }
 0x28d   :  { %v2182_v51 = vpop.permute.xlu1 %954 }
 0x291   :  { %v1298_v35 = vpop.permute.xlu1 %1297 }
 0x292   :  { %v1300_v56 = vunpack.i.h.bf16 %v1298_v35  ;;  %v1299_v50 = vunpack.i.l.bf16 %v1298_v35 }
 0x294   :  { %v980_v63 = vsel %vm979_vm8, %v976_v15, %v1299_v50  ;;  %v981_v24 = vsel %vm979_vm8, %v977_v31, %v1300_v56  ;;  %v967_v50 = vpop.permute.xlu0 %966 }
 0x295   :  { %v835_v60 = vpop.permute.xlu1 %834  ;;  %v983_v62 = vsel %vm29_vm0, %v980_v63, %v1244_v52  ;;  %v984_v39 = vsel %vm29_vm0, %v981_v24, %v1245_v57 }
 0x296   :  { %v987_v2 = vsel %vm986_vm9, %v983_v62, %v1249_v29  ;;  %v988_v8 = vsel %vm986_vm9, %v984_v39, %v1250_v28  ;;  %v974_v54 = vsel %vm971_vm6, %v2159_v4, %v835_v60 }
 0x297   :  { %v991_v23 = vsel %vm990_vm10, %v987_v2, %v1254_v43  ;;  %v992_v37 = vsel %vm990_vm10, %v988_v8, %v1255_v33 }
 0x298   :  { %v995_v3 = vsel %vm994_vm11, %v991_v23, %v1259_v12  ;;  %v996_v48 = vsel %vm994_vm11, %v992_v37, %v1260_v44 }
 0x299   :  { %v847_v21 = vpop.permute.xlu1 %846  ;;  %v999_v36 = vsel %vm998_vm12, %v995_v3, %v1264_v19  ;;  %v1000_v11 = vsel %vm998_vm12, %v996_v48, %v1265_v17 }
 0x29a   :  { %v1003_v18 = vsel %vm1002_vm13, %v999_v36, %v1269_v34  ;;  %v1004_v25 = vsel %vm1002_vm13, %v1000_v11, %v1270_v53  ;;  %v978_v20 = vsel %vm975_vm7, %v974_v54, %v847_v21 }
 0x29b   :  { %v1007_v0 = vsel %vm1006_vm14, %v1003_v18, %v1274_v6  ;;  %v1008_v14 = vsel %vm1006_vm14, %v1004_v25, %v1275_v13 }
 0x29c   :  { %v1011_v47 = vsel %vm1010_vm15, %v1007_v0, %v1279_v58  ;;  %v1012_v49 = vsel %vm1010_vm15, %v1008_v14, %v1280_v45 }
 0x29d   :  { %v859_v40 = vpop.permute.xlu1 %858  ;;  %v1015_v7 = vsel %vm1014_vm1, %v1011_v47, %v1294_v55  ;;  %v1016_v38 = vsel %vm1014_vm1, %v1012_v49, %v1295_v1 }
 0x29e   :  { %v982_v5 = vsel %vm979_vm8, %v978_v20, %v859_v40  ;;  %v1217_v10 = vpack.c.bf16 %v1016_v38, %v1015_v7 }
 0x29f   :  { %v985_v4 = vsel %vm29_vm0, %v982_v5, %v2164_v27 }
 0x2a0   :  { %v989_v26 = vsel %vm986_vm9, %v985_v4, %v2166_v9  ;;  %1219 = vmatpush3.bf16.msk.msra.mxu1 %vm1218_vm3, %v1217_v10 }
 0x2a1   :  { %v993_v42 = vsel %vm990_vm10, %v989_v26, %v2170_v16  ;;  %1203 = vmatprep.subr.mxu1 %v2329_v59 }
 0x2a2   :  { %v997_v22 = vsel %vm994_vm11, %v993_v42, %v2176_v32 }
 0x2a3   :  { %v1001_v35 = vsel %vm998_vm12, %v997_v22, %v919_v46 }
 0x2a4   :  { %v1005_v56 = vsel %vm1002_vm13, %v1001_v35, %v2180_v30 }
 0x2a5   :  { %v1009_v27 = vsel %vm1006_vm14, %v1005_v56, %v943_v41 }
 0x2a6   :  { %v1013_v9 = vsel %vm1010_vm15, %v1009_v27, %v2182_v51 }
 0x2a7   :  { %v1017_v57 = vsel %vm1014_vm1, %v1013_v9, %v967_v50 }
 0x2a8   :  { %1204 = vmatpush3.msk.msra.mxu1 %vm1018_vm2, %v1017_v57 }
 0x2d4   :  { %v1062_v16 = vpop.trf.xlu1 }
 0x2d5   :  { %1206 = vmatmul.mubr.msk.f32.vlgmr.msra.gmra.mrb[0].mxu1 %vm979_vm8, %v1062_v16 }
 0x3a8   :  { %v1147_v59 = vpop.f32.mrb[0].mxu1 }
 0x3a9   :  { %v1207_v32 = vpop.f32.mrb[1].mxu1  ;;  %1152 = vst [vmem:[%s2246_s3] sm:$0xff] %v1147_v59 }

</bundles_post_ra>
